<compile_context>
chip_gen: v7x
topology: tpu7x:2x2x1
jax: 0.10.0
libtpu: 0.0.40
codegen_flags: <defaults>
</compile_context>

<pallas_src>
import jax
import jax.numpy as jnp
from jax import lax
from jax.experimental import pallas as pl
from jax.experimental.pallas import tpu as pltpu


def _round_up(x, m):
    return ((x + m - 1) // m) * m


def _critic_kernel(obs_ref, mean_ref, inv_std_ref,
                   w1t_ref, b1_ref, w2t_ref, b2_ref, w3_ref, b3_ref,
                   out_ref):
    # Normalize + clamp on the (tb, obs_dim) tile (VPU).  inv_std is
    # precomputed in the wrapper, so this is a multiply, not a divide.
    x = jnp.clip((obs_ref[...] - mean_ref[...]) * inv_std_ref[...], -5.0, 5.0)

    # Layer 1 (MXU): h1^T = W1^T @ x^T -- contract the obs_dim axis of both
    # operands (A @ B^T form; handled by the MXU lowering, no explicit
    # relayout of the batch tile).  Result (h1, tb): batch on the lane axis.
    h1 = jnp.tanh(
        lax.dot_general(
            w1t_ref[...], x.astype(w1t_ref.dtype),
            dimension_numbers=(((1,), (1,)), ((), ())),
            preferred_element_type=jnp.float32)
        + b1_ref[...])

    # Layer 2 (MXU): canonical (h2, h1) @ (h1, tb) -> (h2, tb), f32 accumulate.
    h2 = jnp.tanh(
        jnp.dot(w2t_ref[...], h1.astype(w2t_ref.dtype),
                preferred_element_type=jnp.float32)
        + b2_ref[...])

    # Output head (out_features == 1): VPU broadcast-multiply + sublane reduce
    # -> (1, tb) lane-dense row.  b3 comes from SMEM as a scalar.
    out_ref[...] = (jnp.sum(h2 * w3_ref[...], axis=0, keepdims=True)
                    + b3_ref[0])


def _critic_pallas_call(obs, n_tiles, tb, mean_row, inv_std_row,
                        w1t, b1c, w2t, b2c, w3c, b3s):
    """Run the critic over the first n_tiles*tb rows of obs; returns (n_tiles*tb,)."""
    obs_dim = obs.shape[1]
    h1_dim = w1t.shape[0]
    h2_dim = w2t.shape[0]

    const = lambda i: (0, 0)   # weights / stats: VMEM-resident across all steps

    out = pl.pallas_call(
        _critic_kernel,
        out_shape=jax.ShapeDtypeStruct((1, n_tiles * tb), jnp.float32),
        grid_spec=pltpu.PrefetchScalarGridSpec(
            num_scalar_prefetch=0,
            grid=(n_tiles,),
            in_specs=[
                pl.BlockSpec((tb, obs_dim), lambda i: (i, 0)),       # obs tile
                pl.BlockSpec((1, obs_dim), const),                   # rms mean
                pl.BlockSpec((1, obs_dim), const),                   # rms 1/std
                pl.BlockSpec((h1_dim, obs_dim), const),              # W1^T
                pl.BlockSpec((h1_dim, 1), const),                    # b1 (col)
                pl.BlockSpec((h2_dim, h1_dim), const),               # W2^T
                pl.BlockSpec((h2_dim, 1), const),                    # b2 (col)
                pl.BlockSpec((h2_dim, 1), const),                    # w3 (col)
                pl.BlockSpec(memory_space=pltpu.MemorySpace.SMEM),   # b3 scalar
            ],
            out_specs=pl.BlockSpec((1, tb), lambda i: (0, i)),       # lane-dense
        ),
        compiler_params=pltpu.CompilerParams(
            dimension_semantics=("parallel",),
        ),
    )(obs, mean_row, inv_std_row, w1t, b1c, w2t, b2c, w3c, b3s)
    return out.reshape(-1)


def mlp_critic_forward(obs, rms_mean, rms_std, params, *,
                       block_b=8192, use_bf16=False):
    """obs: [B, obs_dim] float32 -> value: [B] float32."""
    (w1, b1), (w2, b2), (w3, b3) = params
    B, obs_dim = obs.shape

    # Hoisted, one-time prep on tiny arrays: transposed weights for the
    # batch-on-lane formulation; bf16 cast (if requested) done here once.
    # Biases / rms stats / output head stay f32 (VPU/EUP work).
    mm_dtype = jnp.bfloat16 if use_bf16 else jnp.float32
    w1t = w1.T.astype(mm_dtype)                 # (h1, obs_dim)
    w2t = w2.T.astype(mm_dtype)                 # (h2, h1)
    b1c = b1.reshape(-1, 1)                     # (h1, 1)
    b2c = b2.reshape(-1, 1)                     # (h2, 1)
    w3c = w3.reshape(-1, 1)                     # (h2, 1)
    b3s = b3.reshape(1)                         # (1,) -> SMEM scalar
    mean_row = rms_mean.reshape(1, -1)
    inv_std_row = (1.0 / rms_std).reshape(1, -1)

    # Batch tile: multiple of 128 so the (1, tb) output block is lane-dense.
    block_b = max(128, _round_up(block_b, 128))
    tb = min(block_b, _round_up(B, 128))
    n_full = B // tb

    parts = []
    if n_full > 0:
        # Main path: iterate complete tiles directly over the original obs
        # array -- no wrapper-side pad/copy of the full batch.
        parts.append(_critic_pallas_call(
            obs, n_full, tb, mean_row, inv_std_row,
            w1t, b1c, w2t, b2c, w3c, b3s))

    tail = B - n_full * tb
    if tail > 0:
        # Tail (< tb rows): slice + pad only the tail; one single-step call.
        tb_tail = _round_up(tail, 128)
        obs_tail = obs[n_full * tb:]
        if tb_tail != tail:
            obs_tail = jnp.pad(obs_tail, ((0, tb_tail - tail), (0, 0)))
        parts.append(_critic_pallas_call(
            obs_tail, 1, tb_tail, mean_row, inv_std_row,
            w1t, b1c, w2t, b2c, w3c, b3s)[:tail])

    return parts[0] if len(parts) == 1 else jnp.concatenate(parts)


def init_params(key, obs_dim, hidden_sizes):
    """Deterministic synthetic init for the v_net Linear layers."""
    sizes = [obs_dim] + list(hidden_sizes) + [1]
    params = []
    for j in range(len(sizes) - 1):
        key, kw, kb = jax.random.split(key, 3)
        fan_in = sizes[j]
        bound = 1.0 / jnp.sqrt(fan_in)
        w = jax.random.uniform(kw, (sizes[j], sizes[j + 1]),
                               minval=-bound, maxval=bound, dtype=jnp.float32)
        b = jax.random.uniform(kb, (sizes[j + 1],),
                               minval=-bound, maxval=bound, dtype=jnp.float32)
        params.append((w, b))
    return params


if __name__ == "__main__":
    obs_dim = 16
    hidden_sizes = (32, 32)

    key = jax.random.PRNGKey(0)

    # RMS state exactly as in MLPCritic.__init__:
    #   sum=0, sumsq=0.01, count=0.01, eps=0.01  ->  mean = 0, std = 1
    rms_sum = jnp.zeros(obs_dim, dtype=jnp.float32)
    rms_sumsq = jnp.ones(obs_dim, dtype=jnp.float32) * 0.01
    rms_count = jnp.float32(0.01)
    rms_eps = jnp.float32(0.01)
    rms_mean = rms_sum / rms_count
    rms_std = jnp.sqrt(jnp.maximum(rms_sumsq / rms_count - rms_mean ** 2, rms_eps))

    key, k_params = jax.random.split(key)
    params = init_params(k_params, obs_dim, hidden_sizes)

    def reference(o):
        x = jnp.clip((o - rms_mean) / rms_std, -5.0, 5.0)
        (w1, b1), (w2, b2), (w3, b3) = params
        h = jnp.tanh(x @ w1 + b1)
        h = jnp.tanh(h @ w2 + b2)
        return jnp.squeeze(h @ w3 + b3, -1)

    # 1) Tiny batch, f32 path: exercises the single padded-tile path.
    key, k1 = jax.random.split(key)
    obs_small = jax.random.normal(k1, (8, obs_dim), dtype=jnp.float32)
    v = jax.block_until_ready(
        mlp_critic_forward(obs_small, rms_mean, rms_std, params))
    assert v.shape == (8,)
    assert jnp.allclose(v, reference(obs_small), atol=1e-5, rtol=1e-5)

    # 2) Ragged batch: main grid over the original obs (no full-array pad)
    #    plus a small padded tail call.
    key, k2 = jax.random.split(key)
    big_b = 1000                       # not a multiple of the batch tile
    obs_big = jax.random.normal(k2, (big_b, obs_dim), dtype=jnp.float32)
    v_big = jax.block_until_ready(
        mlp_critic_forward(obs_big, rms_mean, rms_std, params, block_b=512))
    assert v_big.shape == (big_b,)
    assert jnp.allclose(v_big, reference(obs_big), atol=1e-5, rtol=1e-5)

    # 3) bf16 MXU-operand path (v6e/v7x-friendly; off by default): loose tol.
    v_bf16 = jax.block_until_ready(
        mlp_critic_forward(obs_big, rms_mean, rms_std, params,
                           block_b=512, use_bf16=True))
    assert jnp.allclose(v_bf16, reference(obs_big), atol=5e-2, rtol=5e-2)

    print("KERNEL_OK")
</pallas_src>

<mosaic_0001>
module attributes {stable_mosaic.version = 11 : i64} {
  func.func @_critic_kernel(%arg0: i32, %arg1: memref<128x16xf32, #tpu.memory_space<vmem>>, %arg2: memref<1x16xf32, #tpu.memory_space<vmem>>, %arg3: memref<1x16xf32, #tpu.memory_space<vmem>>, %arg4: memref<32x16xf32, #tpu.memory_space<vmem>>, %arg5: memref<32x1xf32, #tpu.memory_space<vmem>>, %arg6: memref<32x32xf32, #tpu.memory_space<vmem>>, %arg7: memref<32x1xf32, #tpu.memory_space<vmem>>, %arg8: memref<32x1xf32, #tpu.memory_space<vmem>>, %arg9: memref<1xf32, #tpu.memory_space<smem>>, %arg10: memref<1x128xf32, #tpu.memory_space<vmem>>) attributes {dimension_semantics = [#tpu.dimension_semantics<parallel>], iteration_bounds = array<i64: 1>, scalar_prefetch = 0 : i64, scratch_operands = 0 : i64, tpu.core_type = #tpu.core_type<tc>, window_params = [{transform_indices = @transform_0, window_bounds = array<i64: 128, 16>}, {pipeline_mode = #tpu.pipeline_mode<synchronous>, transform_indices = @transform_1, window_bounds = array<i64: 1, 16>}, {pipeline_mode = #tpu.pipeline_mode<synchronous>, transform_indices = @transform_2, window_bounds = array<i64: 1, 16>}, {pipeline_mode = #tpu.pipeline_mode<synchronous>, transform_indices = @transform_3, window_bounds = array<i64: 32, 16>}, {pipeline_mode = #tpu.pipeline_mode<synchronous>, transform_indices = @transform_4, window_bounds = array<i64: 32, 1>}, {pipeline_mode = #tpu.pipeline_mode<synchronous>, transform_indices = @transform_5, window_bounds = array<i64: 32, 32>}, {pipeline_mode = #tpu.pipeline_mode<synchronous>, transform_indices = @transform_6, window_bounds = array<i64: 32, 1>}, {pipeline_mode = #tpu.pipeline_mode<synchronous>, transform_indices = @transform_7, window_bounds = array<i64: 32, 1>}, {transform_indices = @transform_8, window_bounds = array<i64: 1>}, {transform_indices = @transform_9, window_bounds = array<i64: 1, 128>}]} {
    %c0 = arith.constant 0 : index
    %c0_0 = arith.constant 0 : index
    %0 = vector.load %arg1[%c0, %c0_0] : memref<128x16xf32, #tpu.memory_space<vmem>>, vector<128x16xf32>
    %c0_1 = arith.constant 0 : index
    %c0_2 = arith.constant 0 : index
    %1 = vector.load %arg2[%c0_1, %c0_2] : memref<1x16xf32, #tpu.memory_space<vmem>>, vector<1x16xf32>
    %2 = vector.broadcast %1 : vector<1x16xf32> to vector<128x16xf32>
    %3 = arith.subf %0, %2 : vector<128x16xf32>
    %c0_3 = arith.constant 0 : index
    %c0_4 = arith.constant 0 : index
    %4 = vector.load %arg3[%c0_3, %c0_4] : memref<1x16xf32, #tpu.memory_space<vmem>>, vector<1x16xf32>
    %5 = vector.broadcast %4 : vector<1x16xf32> to vector<128x16xf32>
    %6 = arith.mulf %3, %5 : vector<128x16xf32>
    %cst = arith.constant -5.000000e+00 : f32
    %cst_5 = arith.constant 5.000000e+00 : f32
    %7 = vector.broadcast %cst : f32 to vector<128x16xf32>
    %8 = arith.maximumf %7, %6 : vector<128x16xf32>
    %9 = vector.broadcast %cst_5 : f32 to vector<128x16xf32>
    %10 = arith.minimumf %9, %8 : vector<128x16xf32>
    %c0_6 = arith.constant 0 : index
    %c0_7 = arith.constant 0 : index
    %11 = vector.load %arg4[%c0_6, %c0_7] : memref<32x16xf32, #tpu.memory_space<vmem>>, vector<32x16xf32>
    %cst_8 = arith.constant dense<0.000000e+00> : vector<32x128xf32>
    %12 = tpu.matmul %11, %10, %cst_8 {dimension_numbers = #tpu.dot_dimension_numbers<[1], [1], [0], [0], [0, 0, 1, 0], [], []>} : vector<32x16xf32>, vector<128x16xf32>, vector<32x128xf32> -> vector<32x128xf32>
    %c0_9 = arith.constant 0 : index
    %c0_10 = arith.constant 0 : index
    %13 = vector.load %arg5[%c0_9, %c0_10] : memref<32x1xf32, #tpu.memory_space<vmem>>, vector<32x1xf32>
    %14 = vector.broadcast %13 : vector<32x1xf32> to vector<32x128xf32>
    %15 = arith.addf %12, %14 : vector<32x128xf32>
    %16 = math.tanh %15 : vector<32x128xf32>
    %c0_11 = arith.constant 0 : index
    %c0_12 = arith.constant 0 : index
    %17 = vector.load %arg6[%c0_11, %c0_12] : memref<32x32xf32, #tpu.memory_space<vmem>>, vector<32x32xf32>
    %cst_13 = arith.constant dense<0.000000e+00> : vector<32x128xf32>
    %18 = tpu.matmul %17, %16, %cst_13 {dimension_numbers = #tpu.dot_dimension_numbers<[1], [0], [0], [1], [0, 0, 1, 1], [], []>} : vector<32x32xf32>, vector<32x128xf32>, vector<32x128xf32> -> vector<32x128xf32>
    %c0_14 = arith.constant 0 : index
    %c0_15 = arith.constant 0 : index
    %19 = vector.load %arg7[%c0_14, %c0_15] : memref<32x1xf32, #tpu.memory_space<vmem>>, vector<32x1xf32>
    %20 = vector.broadcast %19 : vector<32x1xf32> to vector<32x128xf32>
    %21 = arith.addf %18, %20 : vector<32x128xf32>
    %22 = math.tanh %21 : vector<32x128xf32>
    %c0_16 = arith.constant 0 : index
    %c0_17 = arith.constant 0 : index
    %23 = vector.load %arg8[%c0_16, %c0_17] : memref<32x1xf32, #tpu.memory_space<vmem>>, vector<32x1xf32>
    %24 = vector.broadcast %23 : vector<32x1xf32> to vector<32x128xf32>
    %25 = arith.mulf %22, %24 : vector<32x128xf32>
    %cst_18 = arith.constant dense<0.000000e+00> : vector<128xf32>
    %26 = vector.multi_reduction <add>, %25, %cst_18 [0] : vector<32x128xf32> to vector<128xf32>
    %27 = vector.shape_cast %26 : vector<128xf32> to vector<1x128xf32>
    %c0_19 = arith.constant 0 : index
    %28 = memref.load %arg9[%c0_19] : memref<1xf32, #tpu.memory_space<smem>>
    %29 = vector.broadcast %28 : f32 to vector<1x128xf32>
    %30 = arith.addf %27, %29 : vector<1x128xf32>
    %c0_20 = arith.constant 0 : index
    %c0_21 = arith.constant 0 : index
    %31 = vector.load %arg10[%c0_20, %c0_21] : memref<1x128xf32, #tpu.memory_space<vmem>>, vector<1x128xf32>
    tpu.vector_store %arg10[%c0_20, %c0_21], %30 {strides = array<i32>} : memref<1x128xf32, #tpu.memory_space<vmem>>, vector<1x128xf32>,
    return
  }
  func.func @transform_0(%arg0: i32) -> (i32, i32) {
    %c0_i32 = arith.constant 0 : i32
    %c0_i32_0 = arith.constant 0 : i32
    return %arg0, %c0_i32 : i32, i32
  }
  func.func @transform_1(%arg0: i32) -> (i32, i32) {
    %c0_i32 = arith.constant 0 : i32
    %c0_i32_0 = arith.constant 0 : i32
    %c0_i32_1 = arith.constant 0 : i32
    return %c0_i32, %c0_i32_0 : i32, i32
  }
  func.func @transform_2(%arg0: i32) -> (i32, i32) {
    %c0_i32 = arith.constant 0 : i32
    %c0_i32_0 = arith.constant 0 : i32
    %c0_i32_1 = arith.constant 0 : i32
    return %c0_i32, %c0_i32_0 : i32, i32
  }
  func.func @transform_3(%arg0: i32) -> (i32, i32) {
    %c0_i32 = arith.constant 0 : i32
    %c0_i32_0 = arith.constant 0 : i32
    %c0_i32_1 = arith.constant 0 : i32
    return %c0_i32, %c0_i32_0 : i32, i32
  }
  func.func @transform_4(%arg0: i32) -> (i32, i32) {
    %c0_i32 = arith.constant 0 : i32
    %c0_i32_0 = arith.constant 0 : i32
    %c0_i32_1 = arith.constant 0 : i32
    return %c0_i32, %c0_i32_0 : i32, i32
  }
  func.func @transform_5(%arg0: i32) -> (i32, i32) {
    %c0_i32 = arith.constant 0 : i32
    %c0_i32_0 = arith.constant 0 : i32
    %c0_i32_1 = arith.constant 0 : i32
    return %c0_i32, %c0_i32_0 : i32, i32
  }
  func.func @transform_6(%arg0: i32) -> (i32, i32) {
    %c0_i32 = arith.constant 0 : i32
    %c0_i32_0 = arith.constant 0 : i32
    %c0_i32_1 = arith.constant 0 : i32
    return %c0_i32, %c0_i32_0 : i32, i32
  }
  func.func @transform_7(%arg0: i32) -> (i32, i32) {
    %c0_i32 = arith.constant 0 : i32
    %c0_i32_0 = arith.constant 0 : i32
    %c0_i32_1 = arith.constant 0 : i32
    return %c0_i32, %c0_i32_0 : i32, i32
  }
  func.func @transform_8(%arg0: i32) -> i32 {
    %c0_i32 = arith.constant 0 : i32
    %c0_i32_0 = arith.constant 0 : i32
    return %c0_i32 : i32
  }
  func.func @transform_9(%arg0: i32) -> (i32, i32) {
    %c0_i32 = arith.constant 0 : i32
    %c0_i32_0 = arith.constant 0 : i32
    return %c0_i32, %arg0 : i32, i32
  }
}

</mosaic_0001>

<bundles_post_ra>
// kernel: tpu_custom_call.1
= control target key start
LH: loop header
LB: loop body
LE: loop exit
PB: predicated region body
PF: predicated region fallthrough
CT: control target
= control target key end

     0   :  { %v713_v7 = vmov 0   ;;  %vm156_vm0 = vcmask 130048   ;;  %s976_s0 = inlined_call_operand.vmem [shape: f32[128,16], index: 0, kind: input, shape index: {}]   ;;  %s977_s1 = inlined_call_operand.vmem [shape: f32[1,16], index: 1, kind: input, shape index: {}]   ;;  %s978_s2 = inlined_call_operand.vmem [shape: f32[1,16], index: 2, kind: input, shape index: {}]   ;;  %s979_s3 = inlined_call_operand.vmem [shape: f32[32,16], index: 3, kind: input, shape index: {}]   ;;  %s980_s4 = inlined_call_operand.vmem [shape: f32[32,1], index: 4, kind: input, shape index: {}]   ;;  %s981_s5 = inlined_call_operand.vmem [shape: f32[32,32], index: 5, kind: input, shape index: {}]   ;;  %s982_s6 = inlined_call_operand.vmem [shape: f32[32,1], index: 6, kind: input, shape index: {}]   ;;  %s983_s7 = inlined_call_operand.vmem [shape: f32[32,1], index: 7, kind: input, shape index: {}]   ;;  %s984_s8 = inlined_call_operand.<no memory space> [shape: f32[1], index: 8, kind: input, shape index: {}]   ;;  %s985_s9 = inlined_call_operand.hbm [shape: f32[1,128], index: 9, kind: output, shape index: {}]  }
   0x1   :  { %v34_v0 = vld [vmem:[%s976_s0] sm:$0xff]  ;;  %v35_v1 = vld [vmem:[%s976_s0 + $0x8] sm:$0xff]  ;;  %v36_v6 = vld [vmem:[%s976_s0 + $0x10] sm:$0xff]  ;;  %671 = vset.pattern.permute.xlu0 %v713_v7  ;;  %672 = vset.pattern.permute.xlu1 %v713_v7 }
   0x2   :  { %v774_v2 = vld [vmem:[%s977_s1] ss:$0 sm:$0xff]  ;;  %v37_v8 = vld [vmem:[%s976_s0 + $0x18] sm:$0xff]  ;;  %v39_v11 = vld [vmem:[%s976_s0 + $0x28] sm:$0xff] }
   0x3   :  { %v57_v3 = vsub.f32 %v34_v0, %v774_v2  ;;  %v58_v4 = vsub.f32 %v35_v1, %v774_v2  ;;  %v781_v5 = vld [vmem:[%s978_s2] ss:$0 sm:$0xff]  ;;  %v59_v9 = vsub.f32 %v36_v6, %v774_v2  ;;  %v60_v14 = vsub.f32 %v37_v8, %v774_v2  ;;  %vm805_vm1 = vmpackc.low %vm156_vm0, %vm156_vm0  ;;  %v40_v29 = vld [vmem:[%s976_s0 + $0x30] sm:$0xff] }
   0x4   :  { %v38_v10 = vld [vmem:[%s976_s0 + $0x20] sm:$0xff]  ;;  %v62_v17 = vsub.f32 %v39_v11, %v774_v2  ;;  %v41_v30 = vld [vmem:[%s976_s0 + $0x38] sm:$0xff]  ;;  %v134_v31 = vld [vmem:[%s980_s4 + $0x10] sm:$0xff]  ;;  %v63_v36 = vsub.f32 %v40_v29, %v774_v2 }
   0x5   :  { %v80_v12 = vmul.f32 %v781_v5, %v57_v3  ;;  %v81_v13 = vmul.f32 %v781_v5, %v58_v4  ;;  %v61_v15 = vsub.f32 %v38_v10, %v774_v2  ;;  %v82_v16 = vmul.f32 %v781_v5, %v59_v9  ;;  %v128_v23 = vld [vmem:[%s979_s3] sm:$0xff]  ;;  %v133_v33 = vld [vmem:[%s980_s4 + $0x8] sm:$0xff]  ;;  %148 = vperm.xlu1 %672, %v134_v31  }
   0x6   :  { %v83_v20 = vmul.f32 %v781_v5, %v60_v14  ;;  %v85_v27 = vmul.f32 %v781_v5, %v62_v17  ;;  %593 = vmatprep.mubr.msk.f32.mxu0 %vm156_vm0, %v128_v23  ;;  %v132_v28 = vld [vmem:[%s980_s4] sm:$0xff]  ;;  %v64_v37 = vsub.f32 %v41_v30, %v774_v2 }
   0x7   :  { %v493_v18 = vclamps-f32 %v80_v12, 5.0  ;;  %v494_v19 = vclamps-f32 %v81_v13, 5.0  ;;  %v495_v22 = vclamps-f32 %v82_v16, 5.0  ;;  %v84_v26 = vmul.f32 %v781_v5, %v61_v15  ;;  %138 = vperm.xlu0 %671, %v132_v28  }
   0x8   :  { %v496_v25 = vclamps-f32 %v83_v20, 5.0  ;;  %v498_v35 = vclamps-f32 %v85_v27, 5.0 }
   0x9   :  { %v613_v24 = vpack.c.bf16 %v494_v19, %v493_v18  ;;  %v497_v34 = vclamps-f32 %v84_v26, 5.0 }
   0xa   :  { %v619_v32 = vpack.c.bf16 %v496_v25, %v495_v22 }
   0xb   :  { %615 = vmatprep.subr.msk.bf16.mxu0 %vm805_vm1, %v613_v24 }
   0xc   :  { %618 = vmatpush3.bf16.xpose.msk.msra.mxu0 %vm805_vm1, %v613_v24 }
   0xd   :  { %621 = vmatprep.subr.msk.bf16.mxu0 %vm805_vm1, %v619_v32 }
   0xe   :  { %15 = vsyncpa [#allocation4], 0  ;;  %143 = vperm.xlu0 %671, %v133_v33   ;;  %v135_v38 = vld [vmem:[%s980_s4 + $0x18] sm:$0xff]  ;;  %v310_v39 = vld [vmem:[%s982_s6] sm:$0xff]  ;;  %v625_v40 = vpack.c.bf16 %v498_v35, %v497_v34  ;;  %v86_v41 = vmul.f32 %v781_v5, %v63_v36  ;;  %v87_v42 = vmul.f32 %v781_v5, %v64_v37  ;;  %vm334_vm2 = vcmask 261120   ;;  %s714_s10 = smov [#allocation3]  }
   0xf   :  { %153 = vperm.xlu1 %672, %v135_v38   ;;  %v42_v43 = vld [vmem:[%s976_s0 + $0x40] sm:$0xff]  ;;  %v43_v44 = vld [vmem:[%s976_s0 + $0x48] sm:$0xff]  ;;  %v312_v46 = vld [vmem:[%s982_s6 + $0x10] sm:$0xff]  ;;  %s483_s11 = sshll.u32 %s714_s10, 4  ;;  %s484_s11 = int_to_ptr.vmem [resolvable:$true] %s483_s11 }
  0x10   :  { %v311_v45 = vld [vmem:[%s982_s6 + $0x8] sm:$0xff]  ;;  %v499_v47 = vclamps-f32 %v86_v41, 5.0  ;;  %v500_v48 = vclamps-f32 %v87_v42, 5.0  ;;  %v65_v49 = vsub.f32 %v42_v43, %v774_v2  ;;  %v66_v50 = vsub.f32 %v43_v44, %v774_v2  ;;  %v313_v51 = vld [vmem:[%s982_s6 + $0x18] sm:$0xff]  ;;  %v436_v52 = vld [vmem:[%s983_s7] sm:$0xff]  ;;  %s689_s12 = scalar_lea.vmem %s484_s11, 16  ;;  %p694_p1 = scmp.lt.s32.totalorder %s484_s11, %s484_s11 }
  0x11   :  { %v44_v56 = vld [vmem:[%s976_s0 + $0x50] sm:$0xff]  ;;  %v45_v57 = vld [vmem:[%s976_s0 + $0x58] sm:$0xff]  ;;  %v437_v58 = vld [vmem:[%s983_s7 + $0x8] sm:$0xff]  ;;  %p690_p0 = scmp.ne.s32.totalorder %s484_s11, %s689_s12  ;;  %s693_s13 = scalar_lea.vmem %s484_s11, 32 }
  0x12   :  { %316 = vperm.xlu0 %671, %v310_v39   ;;  %v631_v53 = vpack.c.bf16 %v500_v48, %v499_v47  ;;  %v88_v54 = vmul.f32 %v781_v5, %v65_v49  ;;  %v89_v55 = vmul.f32 %v781_v5, %v66_v50  ;;  %v438_v59 = vld [vmem:[%s983_s7 + $0x10] sm:$0xff]  ;;  %v67_v62 = vsub.f32 %v44_v56, %v774_v2  ;;  %v439_v0 = vld [vmem:[%s983_s7 + $0x18] sm:$0xff]  ;;  %v46_v6 = vld [vmem:[%s976_s0 + $0x60] sm:$0xff]  ;;  %p695_p2 = scmp.lt.s32.totalorder %s693_s13, %s689_s12 }
  0x13   :  { %321 = vperm.xlu1 %672, %v311_v45   ;;  %v68_v63 = vsub.f32 %v45_v57, %v774_v2  ;;  %v47_v7 = vld [vmem:[%s976_s0 + $0x68] sm:$0xff]  ;;  %v69_v10 = vsub.f32 %v46_v6, %v774_v2  ;;  %v48_v15 = vld [vmem:[%s976_s0 + $0x70] sm:$0xff]  ;;  %v49_v16 = vld [vmem:[%s976_s0 + $0x78] sm:$0xff] }
  0x14   :  { %624 = vmatpush3.bf16.xpose.msk.msra.mxu0 %vm805_vm1, %v619_v32  ;;  %v501_v60 = vclamps-f32 %v88_v54, 5.0  ;;  %v502_v61 = vclamps-f32 %v89_v55, 5.0  ;;  %v90_v3 = vmul.f32 %v781_v5, %v67_v62  ;;  %v70_v11 = vsub.f32 %v47_v7, %v774_v2  ;;  %v131_v28 = vld [vmem:[%s979_s3 + $0x18] sm:$0xff]  ;;  %v306_v21 = vld [vmem:[%s981_s5] sm:$0xff]  ;;  %v307_v47 = vld [vmem:[%s981_s5 + $0x8] sm:$0xff]  ;;  %p696_p3 = por %p695_p2, %p694_p1 }
  0x15   :  { %627 = vmatprep.subr.msk.bf16.mxu0 %vm805_vm1, %v625_v40  ;;  %v91_v4 = vmul.f32 %v781_v5, %v68_v63  ;;  %v92_v13 = vmul.f32 %v781_v5, %v69_v10  ;;  %v71_v19 = vsub.f32 %v48_v15, %v774_v2  ;;  %v72_v20 = vsub.f32 %v49_v16, %v774_v2  ;;  %v129_v2 = vld [vmem:[%s979_s3 + $0x8] sm:$0xff]  ;;  %v308_v48 = vld [vmem:[%s981_s5 + $0x10] sm:$0xff]  ;;  %v309_v49 = vld [vmem:[%s981_s5 + $0x18] sm:$0xff] }
  0x16   :  { %326 = vperm.xlu0 %671, %v312_v46   ;;  %v637_v1 = vpack.c.bf16 %v502_v61, %v501_v60  ;;  %v503_v8 = vclamps-f32 %v90_v3, 5.0  ;;  %v93_v14 = vmul.f32 %v781_v5, %v70_v11  ;;  %607 = vmatprep.mubr.msk.f32.mxu1 %vm334_vm2, %v306_v21  ;;  %p697_p4 = pnand %p696_p3, %p690_p0 }
  0x17   :  { %331 = vperm.xlu1 %672, %v313_v51   ;;  %v504_v9 = vclamps-f32 %v91_v4, 5.0  ;;  %v505_v17 = vclamps-f32 %v92_v13, 5.0  ;;  %v94_v23 = vmul.f32 %v781_v5, %v71_v19  ;;  %v95_v24 = vmul.f32 %v781_v5, %v72_v20  ;;  %v130_v5 = vld [vmem:[%s979_s3 + $0x10] sm:$0xff] }
  0x18   :  { %v506_v18 = vclamps-f32 %v93_v14, 5.0  ;;  %v474_v20 = vstv %s984_s8 }
  0x19   :  { %v643_v12 = vpack.c.bf16 %v504_v9, %v503_v8  ;;  %v507_v25 = vclamps-f32 %v94_v23, 5.0  ;;  %v508_v26 = vclamps-f32 %v95_v24, 5.0 }
  0x1a   :  { %442 = vperm.xlu0 %671, %v436_v52   ;;  %v649_v22 = vpack.c.bf16 %v506_v18, %v505_v17 }
  0x1b   :  { %447 = vperm.xlu1 %672, %v437_v58   ;;  %v655_v27 = vpack.c.bf16 %v508_v26, %v507_v25 }
  0x1c   :  { %630 = vmatpush3.bf16.xpose.msk.msra.mxu0 %vm805_vm1, %v625_v40 }
  0x1d   :  { %633 = vmatprep.subr.msk.bf16.mxu0 %vm805_vm1, %v631_v53 }
  0x1e   :  { %452 = vperm.xlu0 %671, %v438_v59  }
  0x1f   :  { %457 = vperm.xlu1 %672, %v439_v0  }
  0x24   :  { %636 = vmatpush3.bf16.xpose.msk.msra.mxu0 %vm805_vm1, %v631_v53 }
  0x25   :  { %639 = vmatprep.subr.msk.bf16.mxu0 %vm805_vm1, %v637_v1 }
  0x2c   :  { %642 = vmatpush3.bf16.xpose.msk.msra.mxu0 %vm805_vm1, %v637_v1 }
  0x2d   :  { %645 = vmatprep.subr.msk.bf16.mxu0 %vm805_vm1, %v643_v12 }
  0x34   :  { %648 = vmatpush3.bf16.xpose.msk.msra.mxu0 %vm805_vm1, %v643_v12 }
  0x35   :  { %651 = vmatprep.subr.msk.bf16.mxu0 %vm805_vm1, %v649_v22 }
  0x3c   :  { %654 = vmatpush3.bf16.xpose.msk.msra.mxu0 %vm805_vm1, %v649_v22 }
  0x3d   :  { %657 = vmatprep.subr.msk.bf16.mxu0 %vm805_vm1, %v655_v27 }
  0x44   :  { %660 = vmatpush3.bf16.xpose.msk.msra.mxu0 %vm805_vm1, %v655_v27 }
  0x4b   :  { %594 = vmatmul.mubr.msk.f32.vlgmr.msra.gmra.mrb[0].mxu0 %vm156_vm0, %v129_v2 }
  0x4c   :  { %596 = vmatprep.mubr.msk.f32.mxu0 %vm156_vm0, %v130_v5 }
  0x4f   :  { %597 = vmatmul.mubr.msk.f32.gmra.mrb[2].mxu0 %vm156_vm0, %v131_v28 }
  0x84   :  { %v149_v30 = vpop.permute.xlu1 %148 }
  0x86   :  { %v139_v29 = vpop.permute.xlu0 %138 }
  0x8d   :  { %v144_v31 = vpop.permute.xlu0 %143 }
  0x8e   :  { %v154_v36 = vpop.permute.xlu1 %153 }
  0x91   :  { %v317_v51 = vpop.permute.xlu0 %316 }
  0x92   :  { %v322_v50 = vpop.permute.xlu1 %321 }
  0x95   :  { %v327_v58 = vpop.permute.xlu0 %326 }
  0x96   :  { %v332_v56 = vpop.permute.xlu1 %331 }
  0x99   :  { %v443_v62 = vpop.permute.xlu0 %442 }
  0x9a   :  { %v448_v0 = vpop.permute.xlu1 %447 }
  0x9d   :  { %v453_v9 = vpop.permute.xlu0 %452 }
  0x9e   :  { %v458_v11 = vpop.permute.xlu1 %457 }
 0x11e   :  { %v595_v32 = vpop.f32.mrb[0].mxu0 }
 0x11f   :  { %v289_v33 = vadd.f32 %v595_v32, %v144_v31  ;;  %v283_v34 = vpop.f32.mrb[1].mxu0 }
 0x120   :  { %v284_v35 = vadd.f32 %v283_v34, %v139_v29 }
 0x121   :  { %673 = vtanh.f32 %v289_v33 }
 0x122   :  { %675 = vtanh.f32 %v284_v35  ;;  %v598_v37 = vpop.f32.mrb[2].mxu0 }
 0x123   :  { %v299_v38 = vadd.f32 %v598_v37, %v154_v36  ;;  %v293_v39 = vpop.f32.mrb[3].mxu0 }
 0x124   :  { %v294_v40 = vadd.f32 %v293_v39, %v149_v30 }
 0x125   :  { %677 = vtanh.f32 %v299_v38 }
 0x126   :  { %679 = vtanh.f32 %v294_v40 }
 0x12b   :  { %v674_v41 = vpop.eup %673 }
 0x12c   :  { %v676_v42 = vpop.eup %675 }
 0x12d   :  { %v661_v43 = vpack.c.bf16 %v674_v41, %v676_v42 }
 0x12f   :  { %v678_v44 = vpop.eup %677  ;;  %662 = vmatprep.subr.bf16.mxu1 %v661_v43 }
 0x130   :  { %v680_v45 = vpop.eup %679  ;;  %664 = vmatpush3.bf16.msra.mxu1 %v661_v43 }
 0x131   :  { %v665_v46 = vpack.c.bf16 %v678_v44, %v680_v45 }
 0x133   :  { %666 = vmatprep.subr.bf16.mxu1 %v665_v46 }
 0x134   :  { %668 = vmatpush3.bf16.msra.mxu1 %v665_v46 }
 0x137   :  { %608 = vmatmul.mubr.msk.f32.vlgmr.msra.gmra.mrb[0].mxu1 %vm334_vm2, %v307_v47 }
 0x138   :  { %610 = vmatprep.mubr.msk.f32.mxu1 %vm334_vm2, %v308_v48 }
 0x13b   :  { %611 = vmatmul.mubr.msk.f32.gmra.mrb[2].mxu1 %vm334_vm2, %v309_v49 }
 0x20a   :  { %v609_v52 = vpop.f32.mrb[0].mxu1 }
 0x20b   :  { %v419_v53 = vadd.f32 %v609_v52, %v322_v50  ;;  %v413_v54 = vpop.f32.mrb[1].mxu1 }
 0x20c   :  { %v414_v55 = vadd.f32 %v413_v54, %v317_v51 }
 0x20d   :  { %681 = vtanh.f32 %v419_v53 }
 0x20e   :  { %683 = vtanh.f32 %v414_v55  ;;  %v612_v57 = vpop.f32.mrb[2].mxu1 }
 0x20f   :  { %v429_v59 = vadd.f32 %v612_v57, %v332_v56  ;;  %v423_v60 = vpop.f32.mrb[3].mxu1 }
 0x210   :  { %v424_v61 = vadd.f32 %v423_v60, %v327_v58 }
 0x211   :  { %685 = vtanh.f32 %v429_v59 }
 0x212   :  { %687 = vtanh.f32 %v424_v61 }
 0x217   :  { %v682_v63 = vpop.eup %681 }
 0x218   :  { %v684_v1 = vpop.eup %683  ;;  %v461_v3 = vmul.f32 %v682_v63, %v448_v0 }
 0x219   :  { %v460_v4 = vmul.f32 %v684_v1, %v443_v62 }
 0x21b   :  { %v686_v6 = vpop.eup %685  ;;  %v464_v7 = vadd.f32 %v461_v3, %v460_v4 }
 0x21c   :  { %v688_v8 = vpop.eup %687  ;;  %v463_v12 = vmul.f32 %v686_v6, %v458_v11 }
 0x21d   :  { %v462_v10 = vmul.f32 %v688_v8, %v453_v9 }
 0x21f   :  { %v465_v13 = vadd.f32 %v464_v7, %v462_v10 }
 0x221   :  { %v466_v14 = vadd.f32 %v465_v13, %v463_v12 }
 0x223   :  { %v467_v15 = vrot.slane %v466_v14, 4 }
 0x225   :  { %v468_v16 = vadd.f32 %v467_v15, %v466_v14 }
 0x227   :  { %v469_v17 = vrot.slane %v468_v16, 2 }
 0x229   :  { %v470_v18 = vadd.f32 %v469_v17, %v468_v16 }
 0x22b   :  { %v471_v19 = vrot.slane %v470_v18, 1 }
 0x22d   :  { %v472_v22 = vadd.f32 %v471_v19, %v470_v18 }
 0x22f   :  { %v475_v23 = vadd.f32 %v474_v20, %v472_v22 }
 0x231   :  { %476 = vst [vmem:[#allocation3] sm:$0x1] %v475_v23 }
 0x232   :  { %700 = shalt.err (!%p697_p4)
}
 0x233   :  { %s701_s16 = scalar_lea.hbm %s985_s9, 16 }
 0x234   :  { %p702_p5 = scmp.ne.s32.totalorder %s985_s9, %s701_s16  ;;  %p705_p6 = scmp.lt.u32.totalorder %s701_s16, %s985_s9 }
 0x236   :  { %p707_p7 = pnand %p705_p6, %p702_p5 }
 0x238   :  { %710 = shalt.err (!%p707_p7)
}
 0x239   :  { %486 = dma.vmem_to_hbm [thread:$0]  %s484_s11, 16, %s985_s9, [#allocation4]  }
 0x23a   :  { %711 = dma.done.wait [#allocation4], 16  }
 0x23b   :  { %712 = vsyncadd [#allocation4], 4294967280 }
 0x23c   :  { %490 = vsyncpa [#allocation4], 1 }

</bundles_post_ra>
